<compile_context>
chip_gen: v5e
topology: v5e:2x2
jax: 0.10.0
libtpu: 0.0.40
codegen_flags: <defaults>
</compile_context>

<pallas_src>
import jax
import jax.numpy as jnp
from jax.experimental import pallas as pl
from jax.experimental.pallas import tpu as pltpu


def _rearrange_patches(x, patch_size):
    # x: [B, C, H, W] -> [B, (H/ps)*(W/ps), ps*ps*C], matching einops
    # 'b c (h s1) (w s2) -> b (h w) (s1 s2 c)'.
    B, C, H, W = x.shape
    h, w = H // patch_size, W // patch_size
    x = x.reshape(B, C, h, patch_size, w, patch_size)          # b c h s1 w s2
    x = jnp.transpose(x, (0, 2, 4, 3, 5, 1))                    # b h w s1 s2 c
    return x.reshape(B, h * w, patch_size * patch_size * C)     # b (h w) (s1 s2 c)


def _patch_embed_kernel(p_ref, w_ref, add_ref, o_ref):
    # p_ref:   (tb, Np_pad, P)      patch rows; row 0 per batch is a zero cls row
    # w_ref:   (P, E_pad)           projection weight (transposed, lane-padded)
    # add_ref: (Np_pad, E_pad)      row 0: cls_token+pos[0]; rows 1..N: bias+pos[1:]
    # o_ref:   (tb, Np_pad, E_pad)
    tb, np_, p = p_ref.shape
    e = o_ref.shape[-1]
    # Np_pad is sublane-aligned, so both reshapes below are free layout views.
    xs = p_ref[...].reshape(tb * np_, p)
    proj = jnp.dot(xs, w_ref[...], preferred_element_type=jnp.float32)  # one big MXU matmul
    proj = proj.reshape(tb, np_, e) + add_ref[...][None, :, :]          # f32 epilogue
    o_ref[...] = proj.astype(o_ref.dtype)                               # aligned full-block store


def _vmem_budget_bytes():
    try:
        cap = int(pltpu.get_tpu_info().vmem_capacity_bytes)
    except Exception:
        cap = 128 * 1024 * 1024
    # Leave headroom for Mosaic internal scratch: ~48 MiB on v7x, ~96 MiB on v5e/v6e.
    return (cap * 3) // 4, cap


def _choose_tb(B, np_pad, bytes_fn, vmem_budget, target_rows, want_even_grid):
    # Largest divisor of B whose tile fits the VMEM budget and the row target.
    # NOTE: if B is prime this degrades to tb=1 (per-batch matmuls) — perf cliff.
    divisors = [d for d in range(1, B + 1) if B % d == 0]
    fits = [d for d in divisors
            if bytes_fn(d) <= vmem_budget and (d * np_pad <= target_rows or d == 1)]
    if not fits:
        fits = [1]
    tb = max(fits)
    if want_even_grid and (B // tb) % 2:
        # Keep both v7x TensorCores busy, but don't shrink tiles below ~512 rows.
        even = [d for d in fits if (B // d) % 2 == 0 and d * np_pad >= 512]
        if even:
            tb = max(even)
    return tb


def patch_embedding_forward(x, params, patch_size, *, use_bf16=True,
                            out_dtype=jnp.float32, target_rows_per_step=4096):
    """Pallas implementation of PatchEmbedding.forward.

    x:      [B, C, H, W] (NCHW, same as PyTorch)
    params: 'weight' [E, P], 'bias' [E], 'cls_token' [1, 1, E], 'positions' [N+1, E]
            (P = patch_size*patch_size*C, N = number of patches)
    returns [B, N+1, E] in out_dtype.
    """
    B, C, H, W = x.shape
    E, P = params["weight"].shape
    N = (H // patch_size) * (W // patch_size)
    Np = N + 1
    E_pad = ((E + 127) // 128) * 128                 # lane-dense output width

    in_dtype = jnp.bfloat16 if use_bf16 else jnp.float32
    seq_align = 16 if use_bf16 else 8                # sublane granularity of input dtype
    Np_pad = ((Np + seq_align - 1) // seq_align) * seq_align

    # ---- host-side prep (layout + tiny parameter math) ----------------------
    # Cast BEFORE the rearrange so the XLA transpose moves half the bytes.
    patches = _rearrange_patches(x.astype(in_dtype), patch_size)        # [B, N, P]
    # Prepend one zero cls patch row per batch + pad seq to Np_pad.
    # zero-row @ W == 0, so the cls output row comes entirely from the addend.
    patches = jnp.pad(patches, ((0, 0), (1, Np_pad - Np), (0, 0)))      # [B, Np_pad, P]

    w_t = params["weight"].astype(jnp.float32).T                        # [P, E]
    cls_row = (params["cls_token"][0, 0, :] + params["positions"][0, :])[None, :]   # [1, E]
    patch_add = params["bias"][None, :] + params["positions"][1:, :]                # [N, E]
    addend = jnp.concatenate([cls_row, patch_add], axis=0)                           # [Np, E]
    addend = jnp.pad(addend, ((0, Np_pad - Np), (0, E_pad - E))).astype(jnp.float32)
    w_t = jnp.pad(w_t, ((0, 0), (0, E_pad - E))).astype(in_dtype)

    # ---- tile choice from a VMEM estimate ------------------------------------
    in_item = jnp.dtype(in_dtype).itemsize
    out_item = jnp.dtype(out_dtype).itemsize

    def est_bytes(tb):
        tile = tb * Np_pad * (P * in_item + E_pad * out_item)           # input + output tile
        consts = P * E_pad * in_item + Np_pad * E_pad * 4               # weight + addend
        return 2 * tile + 2 * consts + (1 << 20)                        # double-buffered + slack

    vmem_budget, vmem_capacity = _vmem_budget_bytes()
    two_tensorcores = vmem_capacity <= 64 * 1024 * 1024                 # v7x heuristic
    tb = _choose_tb(B, Np_pad, est_bytes, vmem_budget,
                    max(target_rows_per_step, Np_pad), two_tensorcores)
    grid = (B // tb,)

    cp_kwargs = {"dimension_semantics": ("parallel",)}
    est = est_bytes(tb)
    if est > 12 * 1024 * 1024:
        cp_kwargs["vmem_limit_bytes"] = int(min(vmem_budget,
                                                max(est + est // 4, 32 * 1024 * 1024)))

    out_pad = pl.pallas_call(
        _patch_embed_kernel,
        out_shape=jax.ShapeDtypeStruct((B, Np_pad, E_pad), out_dtype),
        grid_spec=pltpu.PrefetchScalarGridSpec(
            num_scalar_prefetch=0,
            grid=grid,
            in_specs=[
                pl.BlockSpec((tb, Np_pad, P), lambda i: (i, 0, 0)),
                pl.BlockSpec((P, E_pad), lambda i: (0, 0)),
                pl.BlockSpec((Np_pad, E_pad), lambda i: (0, 0)),
            ],
            out_specs=pl.BlockSpec((tb, Np_pad, E_pad), lambda i: (i, 0, 0)),
        ),
        compiler_params=pltpu.CompilerParams(**cp_kwargs),
    )(patches, w_t, addend)                                             # [B, Np_pad, E_pad]

    if Np_pad != Np or E_pad != E:
        # TODO(synk): consumers that accept the padded [B, Np_pad, E_pad] slab should
        # skip this slice (it costs one extra read+write of the output in XLA).
        out_pad = out_pad[:, :Np, :E]
    return out_pad                                                      # [B, N+1, E]


def _reference_forward(x, params, patch_size):
    # Pure-JAX reference mirroring the PyTorch module.
    B = x.shape[0]
    patches = _rearrange_patches(x, patch_size)
    proj = patches @ params["weight"].T + params["bias"]
    cls = jnp.broadcast_to(params["cls_token"], (B, 1, params["weight"].shape[0]))
    out = jnp.concatenate([cls, proj], axis=1)
    return out + params["positions"][None, :, :]


if __name__ == "__main__":
    # Small shapes consistent with the module:
    # batch=2, in_channels=4, img_size=16, patch_size=4, emb_size=32
    B, C, IMG, PS, E = 2, 4, 16, 4, 32
    N = (IMG // PS) ** 2                 # 16 patches
    P = PS * PS * C                      # 64 = flattened patch dim

    key = jax.random.PRNGKey(0)
    k_x, k_w, k_b, k_cls, k_pos = jax.random.split(key, 5)

    x = jax.random.normal(k_x, (B, C, IMG, IMG), dtype=jnp.float32)
    params = {
        "weight":    jax.random.normal(k_w,   (E, P), dtype=jnp.float32) * 0.02,
        "bias":      jax.random.normal(k_b,   (E,),   dtype=jnp.float32) * 0.02,
        "cls_token": jax.random.normal(k_cls, (1, 1, E), dtype=jnp.float32),
        "positions": jax.random.normal(k_pos, (N + 1, E), dtype=jnp.float32),
    }

    ref = _reference_forward(x, params, PS)

    # Exact path (f32 MXU inputs) — tight tolerance.
    out_f32 = jax.block_until_ready(
        patch_embedding_forward(x, params, PS, use_bf16=False))
    assert out_f32.shape == (B, N + 1, E), out_f32.shape
    assert jnp.allclose(out_f32, ref, atol=1e-5, rtol=1e-5), "f32 mismatch vs reference"

    # Default fast path (bf16 MXU inputs, f32 accumulation) — bf16-appropriate tolerance.
    out = jax.block_until_ready(patch_embedding_forward(x, params, PS))
    assert out.shape == (B, N + 1, E), out.shape
    assert jnp.allclose(out, ref, atol=3e-2, rtol=3e-2), "bf16 mismatch vs reference"

    print("KERNEL_OK")
</pallas_src>

<mosaic_0001>
module attributes {stable_mosaic.version = 11 : i64} {
  func.func @_patch_embed_kernel(%arg0: i32, %arg1: memref<2x24x64xf32, #tpu.memory_space<vmem>>, %arg2: memref<64x128xf32, #tpu.memory_space<vmem>>, %arg3: memref<24x128xf32, #tpu.memory_space<vmem>>, %arg4: memref<2x24x128xf32, #tpu.memory_space<vmem>>) attributes {dimension_semantics = [#tpu.dimension_semantics<parallel>], iteration_bounds = array<i64: 1>, scalar_prefetch = 0 : i64, scratch_operands = 0 : i64, tpu.core_type = #tpu.core_type<tc>, window_params = [{transform_indices = @transform_0, window_bounds = array<i64: 2, 24, 64>}, {pipeline_mode = #tpu.pipeline_mode<synchronous>, transform_indices = @transform_1, window_bounds = array<i64: 64, 128>}, {pipeline_mode = #tpu.pipeline_mode<synchronous>, transform_indices = @transform_2, window_bounds = array<i64: 24, 128>}, {transform_indices = @transform_3, window_bounds = array<i64: 2, 24, 128>}]} {
    %c0 = arith.constant 0 : index
    %c0_0 = arith.constant 0 : index
    %c0_1 = arith.constant 0 : index
    %0 = vector.load %arg1[%c0, %c0_0, %c0_1] : memref<2x24x64xf32, #tpu.memory_space<vmem>>, vector<2x24x64xf32>
    %1 = vector.shape_cast %0 : vector<2x24x64xf32> to vector<48x64xf32>
    %c0_2 = arith.constant 0 : index
    %c0_3 = arith.constant 0 : index
    %2 = vector.load %arg2[%c0_2, %c0_3] : memref<64x128xf32, #tpu.memory_space<vmem>>, vector<64x128xf32>
    %cst = arith.constant dense<0.000000e+00> : vector<48x128xf32>
    %3 = tpu.matmul %1, %2, %cst {dimension_numbers = #tpu.dot_dimension_numbers<[1], [0], [0], [1], [0, 0, 1, 1], [], []>} : vector<48x64xf32>, vector<64x128xf32>, vector<48x128xf32> -> vector<48x128xf32>
    %4 = vector.shape_cast %3 : vector<48x128xf32> to vector<2x24x128xf32>
    %c0_4 = arith.constant 0 : index
    %c0_5 = arith.constant 0 : index
    %5 = vector.load %arg3[%c0_4, %c0_5] : memref<24x128xf32, #tpu.memory_space<vmem>>, vector<24x128xf32>
    %6 = vector.shape_cast %5 : vector<24x128xf32> to vector<1x24x128xf32>
    %7 = vector.broadcast %6 : vector<1x24x128xf32> to vector<2x24x128xf32>
    %8 = arith.addf %4, %7 : vector<2x24x128xf32>
    %c0_6 = arith.constant 0 : index
    %c0_7 = arith.constant 0 : index
    %c0_8 = arith.constant 0 : index
    %9 = vector.load %arg4[%c0_6, %c0_7, %c0_8] : memref<2x24x128xf32, #tpu.memory_space<vmem>>, vector<2x24x128xf32>
    tpu.vector_store %arg4[%c0_6, %c0_7, %c0_8], %8 {strides = array<i32>} : memref<2x24x128xf32, #tpu.memory_space<vmem>>, vector<2x24x128xf32>,
    return
  }
  func.func @transform_0(%arg0: i32) -> (i32, i32, i32) {
    %c0_i32 = arith.constant 0 : i32
    %c0_i32_0 = arith.constant 0 : i32
    %c0_i32_1 = arith.constant 0 : i32
    return %arg0, %c0_i32, %c0_i32_0 : i32, i32, i32
  }
  func.func @transform_1(%arg0: i32) -> (i32, i32) {
    %c0_i32 = arith.constant 0 : i32
    %c0_i32_0 = arith.constant 0 : i32
    %c0_i32_1 = arith.constant 0 : i32
    return %c0_i32, %c0_i32_0 : i32, i32
  }
  func.func @transform_2(%arg0: i32) -> (i32, i32) {
    %c0_i32 = arith.constant 0 : i32
    %c0_i32_0 = arith.constant 0 : i32
    %c0_i32_1 = arith.constant 0 : i32
    return %c0_i32, %c0_i32_0 : i32, i32
  }
  func.func @transform_3(%arg0: i32) -> (i32, i32, i32) {
    %c0_i32 = arith.constant 0 : i32
    %c0_i32_0 = arith.constant 0 : i32
    %c0_i32_1 = arith.constant 0 : i32
    return %arg0, %c0_i32, %c0_i32_0 : i32, i32, i32
  }
}

</mosaic_0001>

<bundles_post_ra>
// kernel: tpu_custom_call.1
= control target key start
LH: loop header
LB: loop body
LE: loop exit
PB: predicated region body
PF: predicated region fallthrough
CT: control target
= control target key end

     0   :  { %8 = vsyncpa [#allocation3], 0  ;;  %s359_s0 = inlined_call_operand.hbm [shape: f32[2,24,64], index: 0, kind: input, shape index: {}]   ;;  %s360_s1 = inlined_call_operand.hbm [shape: f32[64,128], index: 1, kind: input, shape index: {}]   ;;  %s361_s2 = inlined_call_operand.hbm [shape: f32[24,128], index: 2, kind: input, shape index: {}]   ;;  %s362_s3 = inlined_call_operand.hbm [shape: f32[2,24,128], index: 3, kind: output, shape index: {}]  }
   0x1   :  { %9 = vsyncpa [#allocation6], 0 }
   0x2   :  { %10 = vsyncpa [#allocation4], 0  ;;  %s28_s14 = sshll.u32 %s360_s1, 4  ;;  %s303_s15 = smov [#allocation5]   ;;  %s29_s14 = int_to_ptr.hbm [resolvable:$true] %s28_s14 }
   0x3   :  { %s30_s16 = sshll.u32 %s303_s15, 4  ;;  %s15_s19 = sshll.u32 %s359_s0, 4  ;;  %s31_s16 = int_to_ptr.vmem [resolvable:$true] %s30_s16  ;;  %s16_s19 = int_to_ptr.hbm [resolvable:$true] %s15_s19 }
   0x4   :  { %s304_s20 = smov 128   ;;  %s305_s21 = smov 8  }
   0x5   :  { %36 = dma.hbm_to_vmem [thread:$0]  %s29_s14, 1024, %s31_s16, [#allocation6], %s304_s20, %s304_s20, %s305_s21  }
   0x6   :  { %s306_s22 = smov [#allocation2]   ;;  %s41_s1 = sshll.u32 %s361_s2, 4  ;;  %s42_s1 = int_to_ptr.hbm [resolvable:$true] %s41_s1 }
   0x7   :  { %s17_s23 = sshll.u32 %s306_s22, 4  ;;  %s307_s0 = smov [#allocation7]   ;;  %s18_s23 = int_to_ptr.vmem [resolvable:$true] %s17_s23 }
   0x8   :  { %23 = dma.hbm_to_vmem [thread:$0]  %s16_s19, 768, %s18_s23, [#allocation3], %s304_s20, %s304_s20, %s305_s21  }
   0x9   :  { %s43_s26 = sshll.u32 %s307_s0, 4  ;;  %s44_s26 = int_to_ptr.vmem [resolvable:$true] %s43_s26 }
   0xa   :  { %49 = dma.hbm_to_vmem [thread:$0]  %s42_s1, 384, %s44_s26, [#allocation6], %s304_s20, %s304_s20, %s305_s21  }
   0xb   :  { %297 = dma.done.wait [#allocation3], 768  }
   0xc   :  { %298 = vsyncadd [#allocation3], 4294966528 }
   0xd   :  { %299 = dma.done.wait [#allocation6], 1408  }
   0xe   :  { %300 = vsyncadd [#allocation6], 4294965888  ;;  %v75_v0 = vld [vmem:[#allocation5 + $0x38] sm:$0xff]  ;;  %v74_v1 = vld [vmem:[#allocation5 + $0x30] sm:$0xff]  ;;  %vm76_vm0 = vcmask 523264   ;;  %s308_s2 = smov [#allocation8]  }
   0xf   :  { %172 = vmatpush.msra.mxu2 %v75_v0  ;;  %173 = vmatpush.msra.mxu3 %v75_v0  ;;  %v73_v2 = vld [vmem:[#allocation5 + $0x28] sm:$0xff]  ;;  %v72_v3 = vld [vmem:[#allocation5 + $0x20] sm:$0xff]  ;;  %v71_v4 = vld [vmem:[#allocation5 + $0x18] sm:$0xff]  ;;  %s149_s27 = sshll.u32 %s308_s2, 4  ;;  %s151_s30 = sshll.u32 %s362_s3, 4  ;;  %s150_s27 = int_to_ptr.vmem [resolvable:$true] %s149_s27  ;;  %s152_s30 = int_to_ptr.hbm [resolvable:$true] %s151_s30 }
  0x10   :  { %103 = vmatpush.msra.mxu0 %v75_v0  ;;  %171 = vmatpush.msra.mxu1 %v75_v0  ;;  %v70_v5 = vld [vmem:[#allocation5 + $0x10] sm:$0xff]  ;;  %v69_v6 = vld [vmem:[#allocation5 + $0x8] sm:$0xff]  ;;  %v68_v7 = vld [vmem:[#allocation5] sm:$0xff] }
  0x11   :  { %175 = vmatpush.msra.mxu2 %v74_v1  ;;  %176 = vmatpush.msra.mxu3 %v74_v1  ;;  %v64_v8 = vld [vmem:[#allocation2 + $0x10] sm:$0xff]  ;;  %v66_v9 = vld [vmem:[#allocation2 + $0x20] sm:$0xff]  ;;  %v63_v11 = vld [vmem:[#allocation2 + $0x8] sm:$0xff] }
  0x12   :  { %104 = vmatpush.msra.mxu0 %v74_v1  ;;  %174 = vmatpush.msra.mxu1 %v74_v1  ;;  %v62_v10 = vld [vmem:[#allocation2] sm:$0xff]  ;;  %v65_v12 = vld [vmem:[#allocation2 + $0x18] sm:$0xff]  ;;  %v67_v13 = vld [vmem:[#allocation2 + $0x28] sm:$0xff] }
  0x13   :  { %178 = vmatpush.msra.mxu2 %v73_v2  ;;  %179 = vmatpush.msra.mxu3 %v73_v2  ;;  %v130_v14 = vld [vmem:[#allocation7] sm:$0xff]  ;;  %v131_v15 = vld [vmem:[#allocation7 + $0x8] sm:$0xff]  ;;  %v132_v20 = vld [vmem:[#allocation7 + $0x10] sm:$0xff] }
  0x14   :  { %105 = vmatpush.msra.mxu0 %v73_v2  ;;  %177 = vmatpush.msra.mxu1 %v73_v2 }
  0x15   :  { %181 = vmatpush.msra.mxu2 %v72_v3  ;;  %182 = vmatpush.msra.mxu3 %v72_v3 }
  0x16   :  { %106 = vmatpush.msra.mxu0 %v72_v3  ;;  %180 = vmatpush.msra.mxu1 %v72_v3 }
  0x17   :  { %184 = vmatpush.msra.mxu2 %v71_v4  ;;  %185 = vmatpush.msra.mxu3 %v71_v4 }
  0x18   :  { %107 = vmatpush.msra.mxu0 %v71_v4  ;;  %183 = vmatpush.msra.mxu1 %v71_v4 }
  0x19   :  { %187 = vmatpush.msra.mxu2 %v70_v5  ;;  %188 = vmatpush.msra.mxu3 %v70_v5 }
  0x1a   :  { %108 = vmatpush.msra.mxu0 %v70_v5  ;;  %186 = vmatpush.msra.mxu1 %v70_v5 }
  0x1b   :  { %190 = vmatpush.msra.mxu2 %v69_v6  ;;  %191 = vmatpush.msra.mxu3 %v69_v6 }
  0x1c   :  { %109 = vmatpush.msra.mxu0 %v69_v6  ;;  %189 = vmatpush.msra.mxu1 %v69_v6 }
  0x1d   :  { %193 = vmatpush.msra.mxu2 %v68_v7  ;;  %194 = vmatpush.msra.mxu3 %v68_v7 }
  0x1e   :  { %167 = vmatmul.msk.f32.vlgmr.msra.gmra.mxu2 %vm76_vm0, %v64_v8  ;;  %169 = vmatmul.msk.f32.vlgmr.msra.gmra.mxu3 %vm76_vm0, %v66_v9 }
  0x1f   :  { %110 = vmatpush.msra.mxu0 %v68_v7  ;;  %192 = vmatpush.msra.mxu1 %v68_v7 }
  0x20   :  { %165 = vmatmul.msk.f32.vlgmr.msra.gmra.mxu0 %vm76_vm0, %v62_v10  ;;  %166 = vmatmul.msk.f32.vlgmr.msra.gmra.mxu1 %vm76_vm0, %v63_v11 }
  0x26   :  { %168 = vmatmul.msk.f32.gmra.mxu2 %vm76_vm0, %v65_v12  ;;  %170 = vmatmul.msk.f32.gmra.mxu3 %vm76_vm0, %v67_v13 }
  0x9d   :  { %v112_v16 = vpop.f32.mrf.mxu0  ;;  %v115_v17 = vpop.f32.mrf.mxu1 }
  0x9e   :  { %v133_v18 = vadd.f32 %v130_v14, %v112_v16  ;;  %v134_v19 = vadd.f32 %v131_v15, %v115_v17 }
  0xa0   :  { %139 = vst [vmem:[#allocation8] sm:$0xff] %v133_v18 }
  0xa1   :  { %v118_v21 = vpop.f32.mrf.mxu2  ;;  %v124_v22 = vpop.f32.mrf.mxu3  ;;  %140 = vst [vmem:[#allocation8 + $0x8] sm:$0xff] %v134_v19 }
  0xa2   :  { %v135_v23 = vadd.f32 %v132_v20, %v118_v21  ;;  %v137_v24 = vadd.f32 %v131_v15, %v124_v22 }
  0xa4   :  { %141 = vst [vmem:[#allocation8 + $0x10] sm:$0xff] %v135_v23 }
  0xa5   :  { %143 = vst [vmem:[#allocation8 + $0x20] sm:$0xff] %v137_v24 }
  0xa9   :  { %v121_v25 = vpop.f32.mrf.mxu2  ;;  %v127_v26 = vpop.f32.mrf.mxu3 }
  0xaa   :  { %v136_v27 = vadd.f32 %v130_v14, %v121_v25  ;;  %v138_v28 = vadd.f32 %v132_v20, %v127_v26 }
  0xac   :  { %142 = vst [vmem:[#allocation8 + $0x18] sm:$0xff] %v136_v27 }
  0xad   :  { %144 = vst [vmem:[#allocation8 + $0x28] sm:$0xff] %v138_v28 }
  0xae   :  { %157 = dma.vmem_to_hbm [thread:$0]  %s150_s27, 768, %s152_s30, [#allocation4], %s304_s20, %s304_s20, %s305_s21  }
  0xaf   :  { %301 = dma.done.wait [#allocation4], 768  }
  0xb0   :  { %302 = vsyncadd [#allocation4], 4294966528 }
  0xb1   :  { %162 = vsyncpa [#allocation3], 1 }
  0xb2   :  { %163 = vsyncpa [#allocation6], 1 }
  0xb3   :  { %164 = vsyncpa [#allocation4], 1 }

</bundles_post_ra>
